<compile_context>
chip_gen: v7x
topology: tpu7x:2x2x1
jax: 0.10.0
libtpu: 0.0.40
codegen_flags: <defaults>
</compile_context>

<pallas_src>
import jax
import jax.numpy as jnp
from jax.experimental import pallas as pl
from jax.experimental.pallas import tpu as pltpu


def attn_kernel(x_ref, w_ref, misc_ref, out_ref):
    """x_ref   : (B*S, 2H)  rows ordered b*S + s, cols = [encoder | hidden]
       w_ref   : (2H, H)    fused, pre-transposed weights [We^T ; Wh^T]
       misc_ref: (2, H)     row 0 = be + bh, row 1 = wv row
       out_ref : (B, S)     softmax over S (== torch Softmax(dim=0))."""
    B, S = out_ref.shape
    H = w_ref.shape[1]

    # One MXU matmul for both projections + combined bias; stays 2D.
    proj = jnp.dot(x_ref[...], w_ref[...],
                   preferred_element_type=jnp.float32) + misc_ref[0:1, :]

    # Elementwise chain on the dense 2D (B*S, H) tile (VPU / EUP).
    act = jax.nn.sigmoid(proj)
    weighted = act * misc_ref[1:2, :]

    # (B*S, H) -> (B, S, H): leading-dim split only (lane dim untouched and,
    # with batch-major rows, sublane placement identical) -> no relayout.
    # Lane-reduce over H gives the (B, S) energy tile directly.
    energy = jnp.sum(weighted.reshape(B, S, H), axis=-1)          # (B, S)
    # NOTE: the attn_energy bias bv is constant along the softmax axis and
    # cancels exactly in softmax, so it is intentionally omitted.

    # Numerically stable softmax over the sequence (last / lane) axis.
    m = jnp.max(energy, axis=-1, keepdims=True)                   # (B, 1)
    ex = jnp.exp(energy - m)                                      # (B, S)
    denom = jnp.sum(ex, axis=-1, keepdims=True)                   # (B, 1)
    out_ref[...] = ex / denom                                     # exact divide


def _attn_forward_impl(hidden, encoder_outputs, we, be, wh, bh, wv):
    S, B, H = encoder_outputs.shape
    f32 = jnp.float32

    # Batch-major rows b*S + s for both halves of the fused input.
    enc_bm = jnp.transpose(encoder_outputs.astype(f32), (1, 0, 2)).reshape(B * S, H)
    hid_bm = jnp.repeat(hidden.astype(f32), S, axis=0)            # (B*S, H)
    x_cat = jnp.concatenate([enc_bm, hid_bm], axis=1)             # (B*S, 2H)

    # Wrapper-side transpose + concat: no in-kernel weight transposes.
    w_fused = jnp.concatenate([we.astype(f32).T, wh.astype(f32).T], axis=0)  # (2H, H)
    misc = jnp.stack([be.astype(f32) + bh.astype(f32),
                      wv.astype(f32).reshape(H)], axis=0)         # (2, H)

    vmem = pl.BlockSpec(memory_space=pltpu.MemorySpace.VMEM)
    probs_bs = pl.pallas_call(
        attn_kernel,
        out_shape=jax.ShapeDtypeStruct((B, S), f32),
        in_specs=[vmem, vmem, vmem],
        out_specs=vmem,
    )(x_cat, w_fused, misc)

    # (B, S) -> (B, 1, S): free unit-dim insertion (no data movement).
    return probs_bs[:, None, :]


_attn_forward_jit = jax.jit(_attn_forward_impl)


def attn_forward(hidden, encoder_outputs, params):
    """params = (We, be, Wh, bh, Wv, bv) in torch nn.Linear layout (out, in).
    Returns (B, 1, S).  NOTE: `each_size` is unused in the PyTorch forward
    and therefore omitted; bv cancels in the softmax and is not used."""
    we, be, wh, bh, wv, _bv = params
    return _attn_forward_jit(hidden, encoder_outputs, we, be, wh, bh, wv)


def attn_reference(hidden, encoder_outputs, params):
    """Pure-JAX reference mirroring the PyTorch forward exactly (incl. bv)."""
    we, be, wh, bh, wv, bv = params
    e_proj = encoder_outputs @ we.T + be                  # (S, B, H)
    h_proj = hidden @ wh.T + bh                           # (B, H)
    act = jax.nn.sigmoid(e_proj + h_proj[None, :, :])
    energy = act @ wv.T + bv                              # (S, B, 1)
    sm = jax.nn.softmax(energy, axis=0)
    return jnp.transpose(sm, (1, 2, 0))                   # (B, 1, S)


if __name__ == "__main__":
    hidden_size = 32   # self.hidden_size
    seq_len = 8        # encoder_outputs.size(0)
    batch = 2          # encoder_outputs.size(1)

    key = jax.random.PRNGKey(0)
    k_h, k_e, k_we, k_be, k_wh, k_bh, k_wv, k_bv = jax.random.split(key, 8)

    hidden = jax.random.normal(k_h, (batch, hidden_size), jnp.float32)
    encoder_outputs = jax.random.normal(
        k_e, (seq_len, batch, hidden_size), jnp.float32)

    # torch nn.Linear layout: (out_features, in_features)
    params = (
        0.1 * jax.random.normal(k_we, (hidden_size, hidden_size), jnp.float32),  # attn_e.weight
        0.1 * jax.random.normal(k_be, (hidden_size,), jnp.float32),              # attn_e.bias
        0.1 * jax.random.normal(k_wh, (hidden_size, hidden_size), jnp.float32),  # attn_h.weight
        0.1 * jax.random.normal(k_bh, (hidden_size,), jnp.float32),              # attn_h.bias
        0.1 * jax.random.normal(k_wv, (1, hidden_size), jnp.float32),            # attn_energy.weight
        0.1 * jax.random.normal(k_bv, (1,), jnp.float32),                        # attn_energy.bias
    )

    out = jax.block_until_ready(attn_forward(hidden, encoder_outputs, params))
    ref = attn_reference(hidden, encoder_outputs, params)

    assert out.shape == (batch, 1, seq_len), out.shape
    assert jnp.allclose(out, ref, atol=1e-5, rtol=1e-5), "mismatch vs reference"

    print("KERNEL_OK")
</pallas_src>

<mosaic_0001>
module attributes {stable_mosaic.version = 11 : i64} {
  func.func @attn_kernel(%arg0: memref<16x64xf32, #tpu.memory_space<vmem>>, %arg1: memref<64x32xf32, #tpu.memory_space<vmem>>, %arg2: memref<2x32xf32, #tpu.memory_space<vmem>>, %arg3: memref<2x8xf32, #tpu.memory_space<vmem>>) attributes {dimension_semantics = [], scalar_prefetch = 0 : i64, scratch_operands = 0 : i64, tpu.core_type = #tpu.core_type<tc>} {
    %c0 = arith.constant 0 : index
    %c0_0 = arith.constant 0 : index
    %0 = vector.load %arg0[%c0, %c0_0] : memref<16x64xf32, #tpu.memory_space<vmem>>, vector<16x64xf32>
    %c0_1 = arith.constant 0 : index
    %c0_2 = arith.constant 0 : index
    %1 = vector.load %arg1[%c0_1, %c0_2] : memref<64x32xf32, #tpu.memory_space<vmem>>, vector<64x32xf32>
    %cst = arith.constant dense<0.000000e+00> : vector<16x32xf32>
    %2 = tpu.matmul %0, %1, %cst {dimension_numbers = #tpu.dot_dimension_numbers<[1], [0], [0], [1], [0, 0, 1, 1], [], []>} : vector<16x64xf32>, vector<64x32xf32>, vector<16x32xf32> -> vector<16x32xf32>
    %c0_3 = arith.constant 0 : index
    %c0_4 = arith.constant 0 : index
    %3 = vector.load %arg2[%c0_3, %c0_4] : memref<2x32xf32, #tpu.memory_space<vmem>>, vector<1x32xf32>
    %4 = vector.broadcast %3 : vector<1x32xf32> to vector<16x32xf32>
    %5 = arith.addf %2, %4 : vector<16x32xf32>
    %6 = arith.negf %5 : vector<16x32xf32>
    %7 = math.exp %6 : vector<16x32xf32>
    %cst_5 = arith.constant 1.000000e+00 : f32
    %8 = vector.broadcast %cst_5 : f32 to vector<16x32xf32>
    %9 = arith.addf %8, %7 : vector<16x32xf32>
    %10 = arith.divf %8, %9 : vector<16x32xf32>
    %c1 = arith.constant 1 : index
    %c0_6 = arith.constant 0 : index
    %11 = vector.load %arg2[%c1, %c0_6] : memref<2x32xf32, #tpu.memory_space<vmem>>, vector<1x32xf32>
    %12 = vector.broadcast %11 : vector<1x32xf32> to vector<16x32xf32>
    %13 = arith.mulf %10, %12 : vector<16x32xf32>
    %14 = vector.shape_cast %13 : vector<16x32xf32> to vector<2x8x32xf32>
    %cst_7 = arith.constant dense<0.000000e+00> : vector<2x8xf32>
    %15 = vector.multi_reduction <add>, %14, %cst_7 [2] : vector<2x8x32xf32> to vector<2x8xf32>
    %cst_8 = arith.constant dense<0xFF800000> : vector<2xf32>
    %16 = vector.multi_reduction <maximumf>, %15, %cst_8 [1] : vector<2x8xf32> to vector<2xf32>
    %17 = vector.shape_cast %16 : vector<2xf32> to vector<2x1xf32>
    %18 = vector.broadcast %17 : vector<2x1xf32> to vector<2x8xf32>
    %19 = arith.subf %15, %18 : vector<2x8xf32>
    %20 = math.exp %19 : vector<2x8xf32>
    %cst_9 = arith.constant dense<0.000000e+00> : vector<2xf32>
    %21 = vector.multi_reduction <add>, %20, %cst_9 [1] : vector<2x8xf32> to vector<2xf32>
    %22 = vector.shape_cast %21 : vector<2xf32> to vector<2x1xf32>
    %23 = vector.broadcast %22 : vector<2x1xf32> to vector<2x8xf32>
    %24 = arith.divf %20, %23 : vector<2x8xf32>
    %c0_10 = arith.constant 0 : index
    %c0_11 = arith.constant 0 : index
    %25 = vector.load %arg3[%c0_10, %c0_11] : memref<2x8xf32, #tpu.memory_space<vmem>>, vector<2x8xf32>
    tpu.vector_store %arg3[%c0_10, %c0_11], %24 {strides = array<i32>} : memref<2x8xf32, #tpu.memory_space<vmem>>, vector<2x8xf32>,
    return
  }
}

</mosaic_0001>

<bundles_post_ra>
// kernel: _attn_forward_impl.1
= control target key start
LH: loop header
LB: loop body
LE: loop exit
PB: predicated region body
PF: predicated region fallthrough
CT: control target
= control target key end

     0   :  { %vm30_vm0 = vcmask 523264   ;;  %s416_s0 = inlined_call_operand.vmem [shape: f32[16,64], index: 0, kind: input, shape index: {}]   ;;  %s417_s1 = inlined_call_operand.vmem [shape: f32[64,32], index: 1, kind: input, shape index: {}]   ;;  %s418_s2 = inlined_call_operand.vmem [shape: f32[2,32], index: 2, kind: input, shape index: {}]   ;;  %s419_s3 = inlined_call_operand.hbm [shape: f32[2,8], index: 3, kind: output, shape index: {}]  }
   0x1   :  { %v17_v0 = vld [vmem:[%s417_s1] sm:$0xff]  ;;  %v18_v1 = vld [vmem:[%s417_s1 + $0x8] sm:$0xff]  ;;  %v19_v2 = vld [vmem:[%s417_s1 + $0x10] sm:$0xff] }
   0x2   :  { %v278_v3 = vpack.c.bf16 %v18_v1, %v17_v0  ;;  %v20_v4 = vld [vmem:[%s417_s1 + $0x18] sm:$0xff]  ;;  %v21_v6 = vld [vmem:[%s417_s1 + $0x20] sm:$0xff]  ;;  %v22_v7 = vld [vmem:[%s417_s1 + $0x28] sm:$0xff] }
   0x3   :  { %v282_v5 = vpack.c.bf16 %v20_v4, %v19_v2  ;;  %v15_v8 = vld [vmem:[%s416_s0] sm:$0xff] }
   0x4   :  { %279 = vmatprep.subr.bf16.mxu0 %v278_v3  ;;  %275 = vmatprep.mubr.msk.f32.mxu0 %vm30_vm0, %v15_v8 }
   0x5   :  { %8 = vsyncpa [#allocation3], 0  ;;  %281 = vmatpush3.bf16.msra.mxu0 %v278_v3  ;;  %v286_v9 = vpack.c.bf16 %v22_v7, %v21_v6  ;;  %v23_v10 = vld [vmem:[%s417_s1 + $0x30] sm:$0xff]  ;;  %v24_v11 = vld [vmem:[%s417_s1 + $0x38] sm:$0xff]  ;;  %vm131_vm1 = vcmask 261120   ;;  %v140_v32 = vlaneseq  ;;  %vm150_vm2 = vcmask 1041409  }
   0x6   :  { %283 = vmatprep.subr.bf16.mxu0 %v282_v5  ;;  %v290_v12 = vpack.c.bf16 %v24_v11, %v23_v10  ;;  %v16_v13 = vld [vmem:[%s416_s0 + $0x8] sm:$0xff]  ;;  %v243_v14 = vld [vmem:[%s418_s2] ss:$0 sm:$0xff]  ;;  %v248_v25 = vld [vmem:[%s418_s2 + $0x1] ss:$0 sm:$0xff]  ;;  %vm153_vm3 = vcmask 58368  }
   0x7   :  { %v141_v33 = vand.u32 127, %v140_v32  ;;  %v143_v34 = vshrl.u32 %v140_v32, 7  ;;  %v338_v42 = vmov 0   ;;  %s339_s2 = smov [#allocation2]  }
   0x8   :  { %297 = vset.pattern.permute.xlu0 %v338_v42  ;;  %296 = vset.pattern.permute.xlu1 %v338_v42  ;;  %s235_s7 = sshll.u32 %s339_s2, 4  ;;  %s236_s7 = int_to_ptr.vmem [resolvable:$true] %s235_s7 }
   0x9   :  { %285 = vmatpush3.bf16.msra.mxu0 %v282_v5  ;;  %v144_v36 = vsub.s32 %v141_v33, %v143_v34  ;;  %v160_v43 = vsub.s32 0, %v143_v34  ;;  %v164_v44 = vsub.s32 1, %v143_v34  ;;  %s314_s8 = scalar_lea.vmem %s236_s7, 32  ;;  %p319_p1 = scmp.lt.s32.totalorder %s236_s7, %s236_s7 }
   0xa   :  { %287 = vmatprep.subr.bf16.mxu0 %v286_v9  ;;  %p315_p0 = scmp.ne.s32.totalorder %s236_s7, %s314_s8  ;;  %p320_p2 = scmp.lt.s32.totalorder %s314_s8, %s314_s8 }
   0xc   :  { %p321_p3 = por %p320_p2, %p319_p1 }
   0xd   :  { %289 = vmatpush3.bf16.msra.mxu0 %v286_v9 }
   0xe   :  { %291 = vmatprep.subr.bf16.mxu0 %v290_v12  ;;  %p322_p4 = pnand %p321_p3, %p315_p0 }
  0x11   :  { %293 = vmatpush3.bf16.msra.mxu0 %v290_v12 }
  0x14   :  { %276 = vmatmul.mubr.msk.f32.vlgmr.msra.gmra.mrb[0].mxu0 %vm30_vm0, %v16_v13 }
  0xe7   :  { %v277_v15 = vpop.f32.mrb[0].mxu0 }
  0xe8   :  { %v109_v16 = vadd.f32 %v277_v15, %v243_v14  ;;  %v103_v17 = vpop.f32.mrb[1].mxu0 }
  0xe9   :  { %v104_v18 = vadd.f32 %v243_v14, %v103_v17 }
  0xea   :  { %v247_v19 = vmul.f32 -1.442695, %v109_v16 }
  0xeb   :  { %v246_v20 = vmul.f32 -1.442695, %v104_v18 }
  0xec   :  { %298 = vpow2.f32 %v247_v19 }
  0xed   :  { %300 = vpow2.f32 %v246_v20 }
  0xf6   :  { %v299_v21 = vpop.eup %298 }
  0xf7   :  { %v301_v22 = vpop.eup %300  ;;  %v119_v23 = vadd.f32 1.0, %v299_v21 }
  0xf8   :  { %v118_v24 = vadd.f32 1.0, %v301_v22 }
  0xf9   :  { %302 = vrcp.f32 %v119_v23 }
  0xfa   :  { %304 = vrcp.f32 %v118_v24 }
 0x103   :  { %v303_v26 = vpop.eup %302 }
 0x104   :  { %v305_v27 = vpop.eup %304  ;;  %v130_v30 = vmul.f32 %v303_v26, %v248_v25 }
 0x105   :  { %v129_v28 = vmul.f32 %v305_v27, %v248_v25 }
 0x106   :  { %v135_v31 = vsel %vm131_vm1, %v130_v30, 0.0 }
 0x107   :  { %v132_v29 = vsel %vm131_vm1, %v129_v28, 0.0 }
 0x108   :  { %133 = vadd.xlane.f32.xlu0 %v132_v29 }
 0x10c   :  { %136 = vadd.xlane.f32.xlu0 %v135_v31 }
 0x195   :  { %v134_v35 = vpop.xlane.xlu0 %133 }
 0x196   :  { %v145_v38 = vrot.slane %v134_v35, %v144_v36 }
 0x199   :  { %v137_v37 = vpop.xlane.xlu0 %136 }
 0x19a   :  { %v149_v39 = vrot.slane %v137_v37, %v144_v36 }
 0x19c   :  { %v151_v40 = vsel %vm150_vm2, %v149_v39, %v145_v38 }
 0x19d   :  { %v154_v41 = vsel %vm153_vm3, %v151_v40, -inf }
 0x19e   :  { %155 = vmax.xlane.f32.xlu1 %v154_v41 }
 0x22b   :  { %v156_v45 = vpop.xlane.xlu1 %155 }
 0x22c   :  { %v161_v46 = vrot.slane %v156_v45, %v160_v43  ;;  %v165_v47 = vrot.slane %v156_v45, %v164_v44 }
 0x22e   :  { %v168_v48 = vsub.f32 %v134_v35, %v161_v46  ;;  %v169_v49 = vsub.f32 %v137_v37, %v165_v47 }
 0x230   :  { %v170_v50 = vmul.f32 1.442695, %v168_v48  ;;  %v172_v51 = vmul.f32 1.442695, %v169_v49 }
 0x232   :  { %306 = vpow2.f32 %v170_v50 }
 0x233   :  { %308 = vpow2.f32 %v172_v51 }
 0x23c   :  { %v307_v52 = vpop.eup %306 }
 0x23d   :  { %v309_v53 = vpop.eup %308  ;;  %177 = vperm.xlu1 %296, %v307_v52  }
 0x23e   :  { %180 = vperm.xlu0 %297, %v309_v53  }
 0x2bc   :  { %v178_v54 = vpop.permute.xlu1 %177 }
 0x2bd   :  { %v181_v55 = vpop.permute.xlu0 %180  ;;  %v185_v56 = vrot.slane %v178_v54, %v144_v36 }
 0x2be   :  { %v189_v57 = vrot.slane %v181_v55, %v144_v36 }
 0x2c0   :  { %v190_v58 = vsel %vm150_vm2, %v189_v57, %v185_v56 }
 0x2c1   :  { %v192_v59 = vsel %vm153_vm3, %v190_v58, 0.0 }
 0x2c2   :  { %193 = vadd.xlane.f32.xlu1 %v192_v59 }
 0x34f   :  { %v194_v60 = vpop.xlane.xlu1 %193 }
 0x350   :  { %v199_v61 = vrot.slane %v194_v60, %v160_v43  ;;  %v203_v62 = vrot.slane %v194_v60, %v164_v44 }
 0x352   :  { %310 = vrcp.f32 %v199_v61 }
 0x353   :  { %312 = vrcp.f32 %v203_v62 }
 0x35c   :  { %v311_v63 = vpop.eup %310 }
 0x35d   :  { %v207_v0 = vmul.f32 %v311_v63, %v307_v52  ;;  %v313_v1 = vpop.eup %312 }
 0x35e   :  { %v209_v2 = vmul.f32 %v313_v1, %v309_v53 }
 0x35f   :  { %213 = vperm.xlu0 %297, %v207_v0  }
 0x363   :  { %216 = vperm.xlu0 %297, %v209_v2  }
 0x3de   :  { %v214_v3 = vpop.permute.xlu0 %213 }
 0x3df   :  { %v221_v5 = vrot.slane %v214_v3, %v144_v36 }
 0x3e2   :  { %v217_v4 = vpop.permute.xlu0 %216 }
 0x3e3   :  { %v225_v6 = vrot.slane %v217_v4, %v144_v36 }
 0x3e5   :  { %v226_v7 = vsel %vm150_vm2, %v225_v6, %v221_v5 }
 0x3e6   :  { %228 = vst.msk [vmem:[#allocation2] sm:$0x3] %vm153_vm3, %v226_v7 }
 0x3e7   :  { %325 = shalt.err (!%p322_p4)
}
 0x3e8   :  { %s326_s11 = scalar_lea.hbm %s419_s3, 32 }
 0x3e9   :  { %p327_p5 = scmp.ne.s32.totalorder %s419_s3, %s326_s11  ;;  %p330_p6 = scmp.lt.u32.totalorder %s326_s11, %s419_s3 }
 0x3eb   :  { %p332_p7 = pnand %p330_p6, %p327_p5 }
 0x3ed   :  { %335 = shalt.err (!%p332_p7)
}
 0x3ee   :  { %238 = dma.vmem_to_hbm [thread:$0]  %s236_s7, 32, %s419_s3, [#allocation3]  }
 0x3ef   :  { %336 = dma.done.wait [#allocation3], 32  }
 0x3f0   :  { %337 = vsyncadd [#allocation3], 4294967264 }
 0x3f1   :  { %242 = vsyncpa [#allocation3], 1 }

</bundles_post_ra>
